<compile_context>
chip_gen: v5e
topology: v5e:2x2
jax: 0.10.0
libtpu: 0.0.40
codegen_flags: <defaults>
</compile_context>

<pallas_src>
import functools
import math

import jax
import jax.numpy as jnp
from jax.experimental import pallas as pl
from jax.experimental.pallas import tpu as pltpu

# Module hyper-parameters (PyTorch defaults).
TAU = 0.5
THR = 30.0
T1 = 3
T2 = 3

_TB_CAP = 512                              # max batch-tile rows
_VMEM_BUDGET_BYTES = 48 * 1024 * 1024      # conservative: fits v7x 64 MiB/TC
_VMEM_LIMIT_CAP = 56 * 1024 * 1024


def _round_up(x, m):
    return ((x + m - 1) // m) * m


def _inv_apprx(x, t, m):
    """Goldschmidt-style approximate reciprocal, exactly as PyTorch inv_apprx."""
    a = 2.0 - (2.0 / m) * x
    b = 1.0 - (2.0 / m) * x
    for _ in range(t):
        b = b * b
        a = a * (1.0 + b)
    return (2.0 / m) * a


def _combnet_kernel(x_ref, w_ref, b_ref, mask_ref, out_ref, *, kp):
    # One fused MXU pass: [TB, D] x [D, 2*KP] -> [TB, 2*KP], f32 accumulate.
    y = jnp.dot(x_ref[...], w_ref[...], preferred_element_type=jnp.float32)
    y = y + b_ref[...]

    x1 = y[:, :kp]   # net_orig logits (lanes >= K carry zero weights/bias)
    x2 = y[:, kp:]   # net_fake logits

    # x1 = 1 + x1 + 0.5*x1**2 (polynomial exp), with the precomputed lane mask
    # folded in so padded lanes are exactly 0 before every reduction.
    x1 = mask_ref[...] * (1.0 + x1 + 0.5 * x1 * x1)

    # invsum_x1 = inv_apprx(x1.sum(1), t2, thr);  x1 *= invsum_x1
    sum_x1 = jnp.sum(x1, axis=1, keepdims=True)                 # [TB, 1]
    x1 = x1 * _inv_apprx(sum_x1, T2, THR)

    # comp_max_tau(x1, tau, t1, t2): tau column carried separately
    # (algebraically identical to the PyTorch concat). Padded lanes stay 0
    # under squaring/scaling, so sums remain exact.
    res_main = x1                                               # [TB, KP]
    res_tau = jnp.full((x1.shape[0], 1), TAU, dtype=jnp.float32)
    for i in range(T1):
        res_main = res_main * res_main
        res_tau = res_tau * res_tau
        s = jnp.sum(res_main, axis=1, keepdims=True) + res_tau
        m = (2.0 + TAU * TAU) if i == 0 else 2.0
        inv = _inv_apprx(s, T2, m)
        res_main = res_main * inv
        res_tau = res_tau * inv
    cond = res_tau                                              # [TB, 1]

    # out = x1 * (1 - cond) + x2 * cond  -- lane-dense [TB, KP] store
    # (padded lanes are 0 in both x1 and x2, sliced away in the wrapper).
    out_ref[...] = x1 * (1.0 - cond) + x2 * cond


def prepare_combnet_params(w_orig, b_orig, w_fake, b_fake, *, mxu_dtype=jnp.float32):
    """Fuse & lane-pad the two heads once (pad+concat, no scatter). Cacheable."""
    D, K = w_orig.shape
    KP = _round_up(K, 128)
    padk = ((0, 0), (0, KP - K))
    w = jnp.concatenate(
        [jnp.pad(w_orig.astype(mxu_dtype), padk),
         jnp.pad(w_fake.astype(mxu_dtype), padk)], axis=1)              # [D, 2*KP]
    b = jnp.concatenate(
        [jnp.pad(b_orig.reshape(1, K).astype(jnp.float32), padk),
         jnp.pad(b_fake.reshape(1, K).astype(jnp.float32), padk)], axis=1)  # [1, 2*KP]
    mask = (jnp.arange(KP) < K).astype(jnp.float32).reshape(1, KP)      # [1, KP]
    return w, b, mask


def _vmem_footprint_bytes(tb, d, kp, x_itemsize, w_itemsize):
    x_bytes = 2 * tb * d * x_itemsize        # double-buffered x tile
    w_bytes = d * 2 * kp * w_itemsize        # fused W: single resident VMEM copy
    small = (2 * kp + kp) * 4                # bias + lane mask
    tmp_bytes = 6 * tb * 2 * kp * 4          # ~6 live f32 [TB, 2*KP] temporaries
    out_bytes = 2 * tb * kp * 4              # double-buffered lane-dense out tile
    return x_bytes + w_bytes + small + tmp_bytes + out_bytes


def _choose_tb(b, d, kp, x_itemsize, w_itemsize):
    # >=2 grid steps whenever B allows (v7x has 2 TCs), up to 512 rows.
    tb = min(_TB_CAP, max(8, _round_up(-(-b // 2), 8)))
    # Shrink to fit the VMEM budget (halve, sublane-aligned).
    while tb > 8 and _vmem_footprint_bytes(tb, d, kp, x_itemsize, w_itemsize) > _VMEM_BUDGET_BYTES:
        tb = max(8, _round_up(tb // 2, 8))
    return tb


def combnet_he_invapp(x_nchw, w_orig, b_orig, w_fake, b_fake, *,
                      params=None, mxu_dtype=jnp.float32):
    """Flatten NCHW input, fuse/pad the heads, run the tiled Pallas kernel."""
    B = x_nchw.shape[0]
    D = math.prod(x_nchw.shape[1:])
    K = w_orig.shape[1]
    KP = _round_up(K, 128)

    x_flat = x_nchw.reshape(B, D).astype(mxu_dtype)
    if params is None:
        params = prepare_combnet_params(w_orig, b_orig, w_fake, b_fake,
                                        mxu_dtype=mxu_dtype)
    w, b, mask = params

    x_isz = jnp.dtype(mxu_dtype).itemsize
    TB = _choose_tb(B, D, KP, x_isz, x_isz)
    grid = (pl.cdiv(B, TB),)   # no x padding: partial tail block is masked

    footprint = _vmem_footprint_bytes(TB, D, KP, x_isz, x_isz)
    vmem_limit = int(min(_VMEM_LIMIT_CAP, max(2 * footprint, 32 * 1024 * 1024)))

    cost = pl.CostEstimate(
        flops=2 * B * D * (2 * KP),
        transcendentals=0,
        bytes_accessed=(x_isz * B * D + x_isz * D * 2 * KP
                        + 4 * (3 * KP) + 4 * B * KP),
    )

    kernel = functools.partial(_combnet_kernel, kp=KP)

    out_padded = pl.pallas_call(
        kernel,
        out_shape=jax.ShapeDtypeStruct((B, KP), jnp.float32),
        grid_spec=pltpu.PrefetchScalarGridSpec(
            num_scalar_prefetch=0,
            grid=grid,
            in_specs=[
                # x tile: pipelined / double-buffered along the batch axis.
                pl.BlockSpec((TB, D), lambda i: (i, 0)),
                # Fused W, bias, lane mask: whole-array VMEM residents
                # (single copy, fetched once -> no double-buffer VMEM cost).
                pl.BlockSpec(memory_space=pltpu.MemorySpace.VMEM),
                pl.BlockSpec(memory_space=pltpu.MemorySpace.VMEM),
                pl.BlockSpec(memory_space=pltpu.MemorySpace.VMEM),
            ],
            out_specs=pl.BlockSpec((TB, KP), lambda i: (i, 0)),  # lane-dense out
        ),
        compiler_params=pltpu.CompilerParams(
            dimension_semantics=("parallel",),
            vmem_limit_bytes=vmem_limit,
        ),
        cost_estimate=cost,
    )(x_flat, w, b, mask)

    return out_padded[:, :K]


def _reference(x_nchw, w_orig, b_orig, w_fake, b_fake):
    """Pure-JAX reference mirroring the PyTorch forward (for validation)."""
    B = x_nchw.shape[0]
    x = x_nchw.reshape(B, -1).astype(jnp.float32)
    x1 = x @ w_orig + b_orig
    x2 = x @ w_fake + b_fake
    x1 = 1.0 + x1 + 0.5 * x1 ** 2
    inv_sum = _inv_apprx(jnp.sum(x1, axis=1), T2, THR)
    x1 = x1 * inv_sum[:, None]
    # comp_max_tau with explicit concat, as in PyTorch
    res = jnp.concatenate([x1, TAU * jnp.ones((B, 1), x1.dtype)], axis=1)
    for i in range(T1):
        res = res * res
        s = jnp.sum(res, axis=1)
        m = (2.0 + TAU * TAU) if i == 0 else 2.0
        res = res * _inv_apprx(s, T2, m)[:, None]
    cond = res[:, -1:]
    return x1 * (1.0 - cond) + x2 * cond


if __name__ == "__main__":
    key = jax.random.PRNGKey(0)
    kx, k1, k2, k3, k4, kx2 = jax.random.split(key, 6)

    C, H, W = 4, 16, 16
    K = 10
    D = C * H * W

    w_orig = 0.02 * jax.random.normal(k1, (D, K), dtype=jnp.float32)
    b_orig = 0.01 * jax.random.normal(k2, (K,), dtype=jnp.float32)
    w_fake = 0.02 * jax.random.normal(k3, (D, K), dtype=jnp.float32)
    b_fake = 0.01 * jax.random.normal(k4, (K,), dtype=jnp.float32)

    # Fused params can be precomputed once and reused across calls.
    params = prepare_combnet_params(w_orig, b_orig, w_fake, b_fake)

    # Case 1: tiny batch (B < sublane tile).
    B1 = 2
    x1_in = jax.random.normal(kx, (B1, C, H, W), dtype=jnp.float32)
    out1 = jax.block_until_ready(
        combnet_he_invapp(x1_in, w_orig, b_orig, w_fake, b_fake, params=params))
    ref1 = _reference(x1_in, w_orig, b_orig, w_fake, b_fake)
    assert out1.shape == (B1, K)
    assert jnp.allclose(out1, ref1, rtol=2e-4, atol=2e-5), "mismatch vs reference (B=2)"

    # Case 2: batch not divisible by the tile -> exercises the masked tail block
    # (no jnp.pad copy of x) and a multi-step "parallel" grid.
    B2 = 20
    x2_in = jax.random.normal(kx2, (B2, C, H, W), dtype=jnp.float32)
    out2 = jax.block_until_ready(
        combnet_he_invapp(x2_in, w_orig, b_orig, w_fake, b_fake, params=params))
    ref2 = _reference(x2_in, w_orig, b_orig, w_fake, b_fake)
    assert out2.shape == (B2, K)
    assert jnp.allclose(out2, ref2, rtol=2e-4, atol=2e-5), "mismatch vs reference (B=20)"

    print("KERNEL_OK")
</pallas_src>

<mosaic_0001>
module attributes {stable_mosaic.version = 11 : i64} {
  func.func @_combnet_kernel(%arg0: i32, %arg1: memref<8x1024xf32, #tpu.memory_space<vmem>>, %arg2: memref<1024x256xf32, #tpu.memory_space<vmem>>, %arg3: memref<1x256xf32, #tpu.memory_space<vmem>>, %arg4: memref<1x128xf32, #tpu.memory_space<vmem>>, %arg5: memref<8x128xf32, #tpu.memory_space<vmem>>) attributes {dimension_semantics = [#tpu.dimension_semantics<parallel>], iteration_bounds = array<i64: 1>, scalar_prefetch = 0 : i64, scratch_operands = 0 : i64, tpu.core_type = #tpu.core_type<tc>, window_params = [{transform_indices = @transform_0, window_bounds = array<i64: 8, 1024>}, {pipeline_mode = #tpu.pipeline_mode<synchronous>, transform_indices = @transform_1, window_bounds = array<i64: 1024, 256>}, {pipeline_mode = #tpu.pipeline_mode<synchronous>, transform_indices = @transform_2, window_bounds = array<i64: 1, 256>}, {pipeline_mode = #tpu.pipeline_mode<synchronous>, transform_indices = @transform_3, window_bounds = array<i64: 1, 128>}, {transform_indices = @transform_4, window_bounds = array<i64: 8, 128>}]} {
    %c0 = arith.constant 0 : index
    %c0_0 = arith.constant 0 : index
    %0 = vector.load %arg1[%c0, %c0_0] : memref<8x1024xf32, #tpu.memory_space<vmem>>, vector<8x1024xf32>
    %c0_1 = arith.constant 0 : index
    %c0_2 = arith.constant 0 : index
    %1 = vector.load %arg2[%c0_1, %c0_2] : memref<1024x256xf32, #tpu.memory_space<vmem>>, vector<1024x256xf32>
    %cst = arith.constant dense<0.000000e+00> : vector<8x256xf32>
    %2 = tpu.matmul %0, %1, %cst {dimension_numbers = #tpu.dot_dimension_numbers<[1], [0], [0], [1], [0, 0, 1, 1], [], []>} : vector<8x1024xf32>, vector<1024x256xf32>, vector<8x256xf32> -> vector<8x256xf32>
    %c0_3 = arith.constant 0 : index
    %c0_4 = arith.constant 0 : index
    %3 = vector.load %arg3[%c0_3, %c0_4] : memref<1x256xf32, #tpu.memory_space<vmem>>, vector<1x256xf32>
    %4 = vector.broadcast %3 : vector<1x256xf32> to vector<8x256xf32>
    %5 = arith.addf %2, %4 : vector<8x256xf32>
    %6 = vector.extract_strided_slice %5 {offsets = [0, 0], sizes = [8, 128], strides = [1, 1]} : vector<8x256xf32> to vector<8x128xf32>
    %7 = vector.extract_strided_slice %5 {offsets = [0, 128], sizes = [8, 128], strides = [1, 1]} : vector<8x256xf32> to vector<8x128xf32>
    %c0_5 = arith.constant 0 : index
    %c0_6 = arith.constant 0 : index
    %8 = vector.load %arg4[%c0_5, %c0_6] : memref<1x128xf32, #tpu.memory_space<vmem>>, vector<1x128xf32>
    %cst_7 = arith.constant 1.000000e+00 : f32
    %9 = vector.broadcast %cst_7 : f32 to vector<8x128xf32>
    %10 = arith.addf %9, %6 : vector<8x128xf32>
    %cst_8 = arith.constant 5.000000e-01 : f32
    %11 = vector.broadcast %cst_8 : f32 to vector<8x128xf32>
    %12 = arith.mulf %11, %6 : vector<8x128xf32>
    %13 = arith.mulf %12, %6 : vector<8x128xf32>
    %14 = arith.addf %10, %13 : vector<8x128xf32>
    %15 = vector.broadcast %8 : vector<1x128xf32> to vector<8x128xf32>
    %16 = arith.mulf %15, %14 : vector<8x128xf32>
    %cst_9 = arith.constant dense<0.000000e+00> : vector<8xf32>
    %17 = vector.multi_reduction <add>, %16, %cst_9 [1] : vector<8x128xf32> to vector<8xf32>
    %18 = vector.shape_cast %17 : vector<8xf32> to vector<8x1xf32>
    %cst_10 = arith.constant 0.0666666701 : f32
    %19 = vector.broadcast %cst_10 : f32 to vector<8x1xf32>
    %20 = arith.mulf %19, %18 : vector<8x1xf32>
    %cst_11 = arith.constant 2.000000e+00 : f32
    %21 = vector.broadcast %cst_11 : f32 to vector<8x1xf32>
    %22 = arith.subf %21, %20 : vector<8x1xf32>
    %cst_12 = arith.constant 0.0666666701 : f32
    %23 = vector.broadcast %cst_12 : f32 to vector<8x1xf32>
    %24 = arith.mulf %23, %18 : vector<8x1xf32>
    %cst_13 = arith.constant 1.000000e+00 : f32
    %25 = vector.broadcast %cst_13 : f32 to vector<8x1xf32>
    %26 = arith.subf %25, %24 : vector<8x1xf32>
    %27 = arith.mulf %26, %26 : vector<8x1xf32>
    %cst_14 = arith.constant 1.000000e+00 : f32
    %28 = vector.broadcast %cst_14 : f32 to vector<8x1xf32>
    %29 = arith.addf %28, %27 : vector<8x1xf32>
    %30 = arith.mulf %22, %29 : vector<8x1xf32>
    %31 = arith.mulf %27, %27 : vector<8x1xf32>
    %cst_15 = arith.constant 1.000000e+00 : f32
    %32 = vector.broadcast %cst_15 : f32 to vector<8x1xf32>
    %33 = arith.addf %32, %31 : vector<8x1xf32>
    %34 = arith.mulf %30, %33 : vector<8x1xf32>
    %35 = arith.mulf %31, %31 : vector<8x1xf32>
    %cst_16 = arith.constant 1.000000e+00 : f32
    %36 = vector.broadcast %cst_16 : f32 to vector<8x1xf32>
    %37 = arith.addf %36, %35 : vector<8x1xf32>
    %38 = arith.mulf %34, %37 : vector<8x1xf32>
    %cst_17 = arith.constant 0.0666666701 : f32
    %39 = vector.broadcast %cst_17 : f32 to vector<8x1xf32>
    %40 = arith.mulf %39, %38 : vector<8x1xf32>
    %41 = vector.broadcast %40 : vector<8x1xf32> to vector<8x128xf32>
    %42 = arith.mulf %16, %41 : vector<8x128xf32>
    %cst_18 = arith.constant 5.000000e-01 : f32
    %43 = vector.broadcast %cst_18 : f32 to vector<8x1xf32>
    %44 = arith.mulf %42, %42 : vector<8x128xf32>
    %45 = arith.mulf %43, %43 : vector<8x1xf32>
    %cst_19 = arith.constant dense<0.000000e+00> : vector<8xf32>
    %46 = vector.multi_reduction <add>, %44, %cst_19 [1] : vector<8x128xf32> to vector<8xf32>
    %47 = vector.shape_cast %46 : vector<8xf32> to vector<8x1xf32>
    %48 = arith.addf %47, %45 : vector<8x1xf32>
    %cst_20 = arith.constant 0.888888895 : f32
    %49 = vector.broadcast %cst_20 : f32 to vector<8x1xf32>
    %50 = arith.mulf %49, %48 : vector<8x1xf32>
    %cst_21 = arith.constant 2.000000e+00 : f32
    %51 = vector.broadcast %cst_21 : f32 to vector<8x1xf32>
    %52 = arith.subf %51, %50 : vector<8x1xf32>
    %cst_22 = arith.constant 0.888888895 : f32
    %53 = vector.broadcast %cst_22 : f32 to vector<8x1xf32>
    %54 = arith.mulf %53, %48 : vector<8x1xf32>
    %cst_23 = arith.constant 1.000000e+00 : f32
    %55 = vector.broadcast %cst_23 : f32 to vector<8x1xf32>
    %56 = arith.subf %55, %54 : vector<8x1xf32>
    %57 = arith.mulf %56, %56 : vector<8x1xf32>
    %cst_24 = arith.constant 1.000000e+00 : f32
    %58 = vector.broadcast %cst_24 : f32 to vector<8x1xf32>
    %59 = arith.addf %58, %57 : vector<8x1xf32>
    %60 = arith.mulf %52, %59 : vector<8x1xf32>
    %61 = arith.mulf %57, %57 : vector<8x1xf32>
    %cst_25 = arith.constant 1.000000e+00 : f32
    %62 = vector.broadcast %cst_25 : f32 to vector<8x1xf32>
    %63 = arith.addf %62, %61 : vector<8x1xf32>
    %64 = arith.mulf %60, %63 : vector<8x1xf32>
    %65 = arith.mulf %61, %61 : vector<8x1xf32>
    %cst_26 = arith.constant 1.000000e+00 : f32
    %66 = vector.broadcast %cst_26 : f32 to vector<8x1xf32>
    %67 = arith.addf %66, %65 : vector<8x1xf32>
    %68 = arith.mulf %64, %67 : vector<8x1xf32>
    %cst_27 = arith.constant 0.888888895 : f32
    %69 = vector.broadcast %cst_27 : f32 to vector<8x1xf32>
    %70 = arith.mulf %69, %68 : vector<8x1xf32>
    %71 = vector.broadcast %70 : vector<8x1xf32> to vector<8x128xf32>
    %72 = arith.mulf %44, %71 : vector<8x128xf32>
    %73 = arith.mulf %45, %70 : vector<8x1xf32>
    %74 = arith.mulf %72, %72 : vector<8x128xf32>
    %75 = arith.mulf %73, %73 : vector<8x1xf32>
    %cst_28 = arith.constant dense<0.000000e+00> : vector<8xf32>
    %76 = vector.multi_reduction <add>, %74, %cst_28 [1] : vector<8x128xf32> to vector<8xf32>
    %77 = vector.shape_cast %76 : vector<8xf32> to vector<8x1xf32>
    %78 = arith.addf %77, %75 : vector<8x1xf32>
    %cst_29 = arith.constant 1.000000e+00 : f32
    %79 = vector.broadcast %cst_29 : f32 to vector<8x1xf32>
    %80 = arith.mulf %79, %78 : vector<8x1xf32>
    %cst_30 = arith.constant 2.000000e+00 : f32
    %81 = vector.broadcast %cst_30 : f32 to vector<8x1xf32>
    %82 = arith.subf %81, %80 : vector<8x1xf32>
    %cst_31 = arith.constant 1.000000e+00 : f32
    %83 = vector.broadcast %cst_31 : f32 to vector<8x1xf32>
    %84 = arith.mulf %83, %78 : vector<8x1xf32>
    %cst_32 = arith.constant 1.000000e+00 : f32
    %85 = vector.broadcast %cst_32 : f32 to vector<8x1xf32>
    %86 = arith.subf %85, %84 : vector<8x1xf32>
    %87 = arith.mulf %86, %86 : vector<8x1xf32>
    %cst_33 = arith.constant 1.000000e+00 : f32
    %88 = vector.broadcast %cst_33 : f32 to vector<8x1xf32>
    %89 = arith.addf %88, %87 : vector<8x1xf32>
    %90 = arith.mulf %82, %89 : vector<8x1xf32>
    %91 = arith.mulf %87, %87 : vector<8x1xf32>
    %cst_34 = arith.constant 1.000000e+00 : f32
    %92 = vector.broadcast %cst_34 : f32 to vector<8x1xf32>
    %93 = arith.addf %92, %91 : vector<8x1xf32>
    %94 = arith.mulf %90, %93 : vector<8x1xf32>
    %95 = arith.mulf %91, %91 : vector<8x1xf32>
    %cst_35 = arith.constant 1.000000e+00 : f32
    %96 = vector.broadcast %cst_35 : f32 to vector<8x1xf32>
    %97 = arith.addf %96, %95 : vector<8x1xf32>
    %98 = arith.mulf %94, %97 : vector<8x1xf32>
    %cst_36 = arith.constant 1.000000e+00 : f32
    %99 = vector.broadcast %cst_36 : f32 to vector<8x1xf32>
    %100 = arith.mulf %99, %98 : vector<8x1xf32>
    %101 = vector.broadcast %100 : vector<8x1xf32> to vector<8x128xf32>
    %102 = arith.mulf %74, %101 : vector<8x128xf32>
    %103 = arith.mulf %75, %100 : vector<8x1xf32>
    %104 = arith.mulf %102, %102 : vector<8x128xf32>
    %105 = arith.mulf %103, %103 : vector<8x1xf32>
    %cst_37 = arith.constant dense<0.000000e+00> : vector<8xf32>
    %106 = vector.multi_reduction <add>, %104, %cst_37 [1] : vector<8x128xf32> to vector<8xf32>
    %107 = vector.shape_cast %106 : vector<8xf32> to vector<8x1xf32>
    %108 = arith.addf %107, %105 : vector<8x1xf32>
    %cst_38 = arith.constant 1.000000e+00 : f32
    %109 = vector.broadcast %cst_38 : f32 to vector<8x1xf32>
    %110 = arith.mulf %109, %108 : vector<8x1xf32>
    %cst_39 = arith.constant 2.000000e+00 : f32
    %111 = vector.broadcast %cst_39 : f32 to vector<8x1xf32>
    %112 = arith.subf %111, %110 : vector<8x1xf32>
    %cst_40 = arith.constant 1.000000e+00 : f32
    %113 = vector.broadcast %cst_40 : f32 to vector<8x1xf32>
    %114 = arith.mulf %113, %108 : vector<8x1xf32>
    %cst_41 = arith.constant 1.000000e+00 : f32
    %115 = vector.broadcast %cst_41 : f32 to vector<8x1xf32>
    %116 = arith.subf %115, %114 : vector<8x1xf32>
    %117 = arith.mulf %116, %116 : vector<8x1xf32>
    %cst_42 = arith.constant 1.000000e+00 : f32
    %118 = vector.broadcast %cst_42 : f32 to vector<8x1xf32>
    %119 = arith.addf %118, %117 : vector<8x1xf32>
    %120 = arith.mulf %112, %119 : vector<8x1xf32>
    %121 = arith.mulf %117, %117 : vector<8x1xf32>
    %cst_43 = arith.constant 1.000000e+00 : f32
    %122 = vector.broadcast %cst_43 : f32 to vector<8x1xf32>
    %123 = arith.addf %122, %121 : vector<8x1xf32>
    %124 = arith.mulf %120, %123 : vector<8x1xf32>
    %125 = arith.mulf %121, %121 : vector<8x1xf32>
    %cst_44 = arith.constant 1.000000e+00 : f32
    %126 = vector.broadcast %cst_44 : f32 to vector<8x1xf32>
    %127 = arith.addf %126, %125 : vector<8x1xf32>
    %128 = arith.mulf %124, %127 : vector<8x1xf32>
    %cst_45 = arith.constant 1.000000e+00 : f32
    %129 = vector.broadcast %cst_45 : f32 to vector<8x1xf32>
    %130 = arith.mulf %129, %128 : vector<8x1xf32>
    %131 = arith.mulf %105, %130 : vector<8x1xf32>
    %cst_46 = arith.constant 1.000000e+00 : f32
    %132 = vector.broadcast %cst_46 : f32 to vector<8x1xf32>
    %133 = arith.subf %132, %131 : vector<8x1xf32>
    %134 = vector.broadcast %133 : vector<8x1xf32> to vector<8x128xf32>
    %135 = arith.mulf %42, %134 : vector<8x128xf32>
    %136 = vector.broadcast %131 : vector<8x1xf32> to vector<8x128xf32>
    %137 = arith.mulf %7, %136 : vector<8x128xf32>
    %138 = arith.addf %135, %137 : vector<8x128xf32>
    %c0_47 = arith.constant 0 : index
    %c0_48 = arith.constant 0 : index
    %139 = vector.load %arg5[%c0_47, %c0_48] : memref<8x128xf32, #tpu.memory_space<vmem>>, vector<8x128xf32>
    tpu.vector_store %arg5[%c0_47, %c0_48], %138 {strides = array<i32>} : memref<8x128xf32, #tpu.memory_space<vmem>>, vector<8x128xf32>,
    return
  }
  func.func @transform_0(%arg0: i32) -> (i32, i32) {
    %c0_i32 = arith.constant 0 : i32
    %c0_i32_0 = arith.constant 0 : i32
    return %arg0, %c0_i32 : i32, i32
  }
  func.func @transform_1(%arg0: i32) -> (i32, i32) {
    %c0_i32 = arith.constant 0 : i32
    %c0_i32_0 = arith.constant 0 : i32
    %c0_i32_1 = arith.constant 0 : i32
    return %c0_i32, %c0_i32_0 : i32, i32
  }
  func.func @transform_2(%arg0: i32) -> (i32, i32) {
    %c0_i32 = arith.constant 0 : i32
    %c0_i32_0 = arith.constant 0 : i32
    %c0_i32_1 = arith.constant 0 : i32
    return %c0_i32, %c0_i32_0 : i32, i32
  }
  func.func @transform_3(%arg0: i32) -> (i32, i32) {
    %c0_i32 = arith.constant 0 : i32
    %c0_i32_0 = arith.constant 0 : i32
    %c0_i32_1 = arith.constant 0 : i32
    return %c0_i32, %c0_i32_0 : i32, i32
  }
  func.func @transform_4(%arg0: i32) -> (i32, i32) {
    %c0_i32 = arith.constant 0 : i32
    %c0_i32_0 = arith.constant 0 : i32
    return %arg0, %c0_i32 : i32, i32
  }
}

</mosaic_0001>

<bundles_post_ra>
// kernel: tpu_custom_call.1
= control target key start
LH: loop header
LB: loop body
LE: loop exit
PB: predicated region body
PF: predicated region fallthrough
CT: control target
= control target key end

     0   :  { %9 = vsyncpa [#allocation3], 0  ;;  %s1008_s0 = inlined_call_operand.hbm [shape: f32[2,1024], index: 0, kind: input, shape index: {}]   ;;  %s1009_s1 = inlined_call_operand.hbm [shape: f32[1024,256], index: 1, kind: input, shape index: {}]   ;;  %s1010_s2 = inlined_call_operand.hbm [shape: f32[1,256], index: 2, kind: input, shape index: {}]   ;;  %s1011_s3 = inlined_call_operand.vmem [shape: f32[1,128], index: 3, kind: input, shape index: {}]   ;;  %s1012_s4 = inlined_call_operand.hbm [shape: f32[2,128], index: 4, kind: output, shape index: {}]  }
   0x1   :  { %10 = vsyncpa [#allocation6], 0 }
   0x2   :  { %11 = vsyncpa [#allocation4], 0 }
   0x3   :  { %15 = vsyncadd [#allocation3], 768  ;;  %s29_s17 = sshll.u32 %s1009_s1, 4  ;;  %s907_s18 = smov [#allocation5]   ;;  %s30_s17 = int_to_ptr.hbm [resolvable:$true] %s29_s17 }
   0x4   :  { %s31_s19 = sshll.u32 %s907_s18, 4  ;;  %s16_s22 = sshll.u32 %s1008_s0, 4  ;;  %s32_s19 = int_to_ptr.vmem [resolvable:$true] %s31_s19  ;;  %s17_s22 = int_to_ptr.hbm [resolvable:$true] %s16_s22 }
   0x5   :  { %s908_s23 = smov 256   ;;  %s909_s24 = smov 16  }
   0x6   :  { %37 = dma.hbm_to_vmem [thread:$0]  %s30_s17, 32768, %s32_s19, [#allocation6], %s908_s23, %s908_s23, %s909_s24  }
   0x7   :  { %s910_s25 = smov [#allocation2]   ;;  %s43_s29 = sshll.u32 %s1010_s2, 4  ;;  %s44_s29 = int_to_ptr.hbm [resolvable:$true] %s43_s29 }
   0x8   :  { %s18_s26 = sshll.u32 %s910_s25, 4  ;;  %s911_s1 = smov [#allocation7]   ;;  %s19_s26 = int_to_ptr.vmem [resolvable:$true] %s18_s26 }
   0x9   :  { %24 = dma.hbm_to_vmem [thread:$0]  %s17_s22, 256, %s19_s26, [#allocation3], %s908_s23, %s908_s23, %s909_s24  }
   0xa   :  { %s45_s30 = sshll.u32 %s911_s1, 4  ;;  %s46_s30 = int_to_ptr.vmem [resolvable:$true] %s45_s30 }
   0xb   :  { %48 = dma.hbm_to_vmem [thread:$0]  %s44_s29, 32, %s46_s30, [#allocation6]  }
   0xc   :  { %901 = dma.done.wait [#allocation3], 1024  }
   0xd   :  { %902 = vsyncadd [#allocation3], 4294966272 }
   0xe   :  { %903 = dma.done.wait [#allocation6], 32800  }
   0xf   :  { %904 = vsyncadd [#allocation6], 4294934496  ;;  %v165_v0 = vld [vmem:[#allocation5 + $0x2f0] sm:$0xff]  ;;  %v163_v2 = vld [vmem:[#allocation5 + $0x2e0] sm:$0xff] }
  0x10   :  { %v101_v1 = vld [vmem:[#allocation5 + $0xf0] sm:$0xff]  ;;  %412 = vmatpush.msra.mxu2 %v165_v0  ;;  %v99_v4 = vld [vmem:[#allocation5 + $0xe0] sm:$0xff] }
  0x11   :  { %372 = vmatpush.msra.mxu0 %v101_v1  ;;  %v197_v3 = vld [vmem:[#allocation5 + $0x3f0] sm:$0xff]  ;;  %v195_v7 = vld [vmem:[#allocation5 + $0x3e0] sm:$0xff] }
  0x12   :  { %v133_v5 = vld [vmem:[#allocation5 + $0x1f0] sm:$0xff]  ;;  %432 = vmatpush.msra.mxu3 %v197_v3  ;;  %413 = vmatpush.msra.mxu2 %v163_v2  ;;  %v131_v9 = vld [vmem:[#allocation5 + $0x1e0] sm:$0xff] }
  0x13   :  { %392 = vmatpush.msra.mxu1 %v133_v5  ;;  %v161_v6 = vld [vmem:[#allocation5 + $0x2d0] sm:$0xff]  ;;  %373 = vmatpush.msra.mxu0 %v99_v4  ;;  %v159_v11 = vld [vmem:[#allocation5 + $0x2c0] sm:$0xff] }
  0x14   :  { %v97_v8 = vld [vmem:[#allocation5 + $0xd0] sm:$0xff]  ;;  %433 = vmatpush.msra.mxu3 %v195_v7  ;;  %v95_v12 = vld [vmem:[#allocation5 + $0xc0] sm:$0xff]  ;;  %414 = vmatpush.msra.mxu2 %v161_v6 }
  0x15   :  { %v193_v10 = vld [vmem:[#allocation5 + $0x3d0] sm:$0xff]  ;;  %393 = vmatpush.msra.mxu1 %v131_v9  ;;  %374 = vmatpush.msra.mxu0 %v97_v8  ;;  %v191_v14 = vld [vmem:[#allocation5 + $0x3c0] sm:$0xff] }
  0x16   :  { %v129_v13 = vld [vmem:[#allocation5 + $0x1d0] sm:$0xff]  ;;  %v127_v15 = vld [vmem:[#allocation5 + $0x1c0] sm:$0xff]  ;;  %434 = vmatpush.msra.mxu3 %v193_v10  ;;  %415 = vmatpush.msra.mxu2 %v159_v11 }
  0x17   :  { %394 = vmatpush.msra.mxu1 %v129_v13  ;;  %v157_v16 = vld [vmem:[#allocation5 + $0x2b0] sm:$0xff]  ;;  %375 = vmatpush.msra.mxu0 %v95_v12  ;;  %v155_v20 = vld [vmem:[#allocation5 + $0x2a0] sm:$0xff] }
  0x18   :  { %v93_v17 = vld [vmem:[#allocation5 + $0xb0] sm:$0xff]  ;;  %435 = vmatpush.msra.mxu3 %v191_v14  ;;  %v91_v21 = vld [vmem:[#allocation5 + $0xa0] sm:$0xff]  ;;  %416 = vmatpush.msra.mxu2 %v157_v16 }
  0x19   :  { %v189_v18 = vld [vmem:[#allocation5 + $0x3b0] sm:$0xff]  ;;  %395 = vmatpush.msra.mxu1 %v127_v15  ;;  %376 = vmatpush.msra.mxu0 %v93_v17  ;;  %v187_v22 = vld [vmem:[#allocation5 + $0x3a0] sm:$0xff] }
  0x1a   :  { %v125_v19 = vld [vmem:[#allocation5 + $0x1b0] sm:$0xff]  ;;  %v123_v23 = vld [vmem:[#allocation5 + $0x1a0] sm:$0xff]  ;;  %436 = vmatpush.msra.mxu3 %v189_v18  ;;  %417 = vmatpush.msra.mxu2 %v155_v20 }
  0x1b   :  { %396 = vmatpush.msra.mxu1 %v125_v19  ;;  %v153_v24 = vld [vmem:[#allocation5 + $0x290] sm:$0xff]  ;;  %377 = vmatpush.msra.mxu0 %v91_v21  ;;  %v151_v28 = vld [vmem:[#allocation5 + $0x280] sm:$0xff] }
  0x1c   :  { %v89_v25 = vld [vmem:[#allocation5 + $0x90] sm:$0xff]  ;;  %437 = vmatpush.msra.mxu3 %v187_v22  ;;  %v87_v29 = vld [vmem:[#allocation5 + $0x80] sm:$0xff]  ;;  %418 = vmatpush.msra.mxu2 %v153_v24 }
  0x1d   :  { %v185_v26 = vld [vmem:[#allocation5 + $0x390] sm:$0xff]  ;;  %397 = vmatpush.msra.mxu1 %v123_v23  ;;  %378 = vmatpush.msra.mxu0 %v89_v25  ;;  %v183_v30 = vld [vmem:[#allocation5 + $0x380] sm:$0xff] }
  0x1e   :  { %v121_v27 = vld [vmem:[#allocation5 + $0x190] sm:$0xff]  ;;  %v119_v31 = vld [vmem:[#allocation5 + $0x180] sm:$0xff]  ;;  %438 = vmatpush.msra.mxu3 %v185_v26  ;;  %419 = vmatpush.msra.mxu2 %v151_v28 }
  0x1f   :  { %398 = vmatpush.msra.mxu1 %v121_v27  ;;  %v149_v32 = vld [vmem:[#allocation5 + $0x270] sm:$0xff]  ;;  %379 = vmatpush.msra.mxu0 %v87_v29  ;;  %v147_v36 = vld [vmem:[#allocation5 + $0x260] sm:$0xff] }
  0x20   :  { %v85_v33 = vld [vmem:[#allocation5 + $0x70] sm:$0xff]  ;;  %439 = vmatpush.msra.mxu3 %v183_v30  ;;  %v83_v37 = vld [vmem:[#allocation5 + $0x60] sm:$0xff]  ;;  %420 = vmatpush.msra.mxu2 %v149_v32  ;;  %v64_v32 = vld [vmem:[#allocation2 + $0x8] sm:$0xff] }
  0x21   :  { %v181_v34 = vld [vmem:[#allocation5 + $0x370] sm:$0xff]  ;;  %399 = vmatpush.msra.mxu1 %v119_v31  ;;  %380 = vmatpush.msra.mxu0 %v85_v33  ;;  %v179_v38 = vld [vmem:[#allocation5 + $0x360] sm:$0xff]  ;;  %v66_v33 = vld [vmem:[#allocation2 + $0x18] sm:$0xff]  ;;  %349 = vst [vmem:[#allocation1 + $0x20] ss:$4 sm:$0xff] %v64_v32 }
  0x22   :  { %v117_v35 = vld [vmem:[#allocation5 + $0x170] sm:$0xff]  ;;  %v115_v39 = vld [vmem:[#allocation5 + $0x160] sm:$0xff]  ;;  %440 = vmatpush.msra.mxu3 %v181_v34  ;;  %421 = vmatpush.msra.mxu2 %v147_v36  ;;  %v68_v34 = vld [vmem:[#allocation2 + $0x28] sm:$0xff]  ;;  %351 = vst [vmem:[#allocation1 + $0x21] ss:$4 sm:$0xff] %v66_v33 }
  0x23   :  { %400 = vmatpush.msra.mxu1 %v117_v35  ;;  %v145_v40 = vld [vmem:[#allocation5 + $0x250] sm:$0xff]  ;;  %381 = vmatpush.msra.mxu0 %v83_v37  ;;  %v143_v44 = vld [vmem:[#allocation5 + $0x240] sm:$0xff]  ;;  %v70_v35 = vld [vmem:[#allocation2 + $0x38] sm:$0xff]  ;;  %353 = vst [vmem:[#allocation1 + $0x22] ss:$4 sm:$0xff] %v68_v34 }
  0x24   :  { %v81_v41 = vld [vmem:[#allocation5 + $0x50] sm:$0xff]  ;;  %441 = vmatpush.msra.mxu3 %v179_v38  ;;  %v79_v45 = vld [vmem:[#allocation5 + $0x40] sm:$0xff]  ;;  %422 = vmatpush.msra.mxu2 %v145_v40  ;;  %355 = vst [vmem:[#allocation1 + $0x23] ss:$4 sm:$0xff] %v70_v35 }
  0x25   :  { %v177_v42 = vld [vmem:[#allocation5 + $0x350] sm:$0xff]  ;;  %401 = vmatpush.msra.mxu1 %v115_v39  ;;  %382 = vmatpush.msra.mxu0 %v81_v41  ;;  %v175_v46 = vld [vmem:[#allocation5 + $0x340] sm:$0xff] }
  0x26   :  { %v113_v43 = vld [vmem:[#allocation5 + $0x150] sm:$0xff]  ;;  %v111_v47 = vld [vmem:[#allocation5 + $0x140] sm:$0xff]  ;;  %442 = vmatpush.msra.mxu3 %v177_v42  ;;  %423 = vmatpush.msra.mxu2 %v143_v44 }
  0x27   :  { %402 = vmatpush.msra.mxu1 %v113_v43  ;;  %v141_v48 = vld [vmem:[#allocation5 + $0x230] sm:$0xff]  ;;  %383 = vmatpush.msra.mxu0 %v79_v45  ;;  %v139_v52 = vld [vmem:[#allocation5 + $0x220] sm:$0xff] }
  0x28   :  { %v77_v49 = vld [vmem:[#allocation5 + $0x30] sm:$0xff]  ;;  %443 = vmatpush.msra.mxu3 %v175_v46  ;;  %v75_v53 = vld [vmem:[#allocation5 + $0x20] sm:$0xff]  ;;  %424 = vmatpush.msra.mxu2 %v141_v48 }
  0x29   :  { %v173_v50 = vld [vmem:[#allocation5 + $0x330] sm:$0xff]  ;;  %403 = vmatpush.msra.mxu1 %v111_v47  ;;  %384 = vmatpush.msra.mxu0 %v77_v49  ;;  %v171_v54 = vld [vmem:[#allocation5 + $0x320] sm:$0xff] }
  0x2a   :  { %v109_v51 = vld [vmem:[#allocation5 + $0x130] sm:$0xff]  ;;  %v107_v55 = vld [vmem:[#allocation5 + $0x120] sm:$0xff]  ;;  %444 = vmatpush.msra.mxu3 %v173_v50  ;;  %425 = vmatpush.msra.mxu2 %v139_v52 }
  0x2b   :  { %404 = vmatpush.msra.mxu1 %v109_v51  ;;  %v137_v56 = vld [vmem:[#allocation5 + $0x210] sm:$0xff]  ;;  %385 = vmatpush.msra.mxu0 %v75_v53  ;;  %v135_v60 = vld [vmem:[#allocation5 + $0x200] sm:$0xff] }
  0x2c   :  { %v73_v57 = vld [vmem:[#allocation5 + $0x10] sm:$0xff]  ;;  %445 = vmatpush.msra.mxu3 %v171_v54  ;;  %v71_v61 = vld [vmem:[#allocation5] sm:$0xff]  ;;  %426 = vmatpush.msra.mxu2 %v137_v56 }
  0x2d   :  { %v169_v58 = vld [vmem:[#allocation5 + $0x310] sm:$0xff]  ;;  %405 = vmatpush.msra.mxu1 %v107_v55  ;;  %386 = vmatpush.msra.mxu0 %v73_v57  ;;  %v167_v63 = vld [vmem:[#allocation5 + $0x300] sm:$0xff] }
  0x2e   :  { %v105_v59 = vld [vmem:[#allocation5 + $0x110] sm:$0xff]  ;;  %446 = vmatpush.msra.mxu3 %v169_v58  ;;  %427 = vmatpush.msra.mxu2 %v135_v60  ;;  %v291_v2 = vld [vmem:[#allocation5 + $0x6e0] sm:$0xff] }
  0x2f   :  { %v293_v62 = vld [vmem:[#allocation5 + $0x6f0] sm:$0xff]  ;;  %406 = vmatpush.msra.mxu1 %v105_v59  ;;  %387 = vmatpush.msra.mxu0 %v71_v61  ;;  %v103_v3 = vld [vmem:[#allocation5 + $0x100] sm:$0xff] }
  0x30   :  { %v229_v0 = vld [vmem:[#allocation5 + $0x4f0] sm:$0xff]  ;;  %492 = vmatpush.msrb.mxu2 %v293_v62  ;;  %447 = vmatpush.msra.mxu3 %v167_v63  ;;  %v227_v4 = vld [vmem:[#allocation5 + $0x4e0] sm:$0xff] }
  0x31   :  { %v325_v1 = vld [vmem:[#allocation5 + $0x7f0] sm:$0xff]  ;;  %452 = vmatpush.msrb.mxu0 %v229_v0  ;;  %v323_v7 = vld [vmem:[#allocation5 + $0x7e0] sm:$0xff]  ;;  %407 = vmatpush.msra.mxu1 %v103_v3 }
  0x32   :  { %v261_v5 = vld [vmem:[#allocation5 + $0x5f0] sm:$0xff]  ;;  %512 = vmatpush.msrb.mxu3 %v325_v1  ;;  %493 = vmatpush.msrb.mxu2 %v291_v2  ;;  %v259_v9 = vld [vmem:[#allocation5 + $0x5e0] sm:$0xff] }
  0x33   :  { %v289_v6 = vld [vmem:[#allocation5 + $0x6d0] sm:$0xff]  ;;  %v287_v10 = vld [vmem:[#allocation5 + $0x6c0] sm:$0xff]  ;;  %453 = vmatpush.msrb.mxu0 %v227_v4  ;;  %472 = vmatpush.msrb.mxu1 %v261_v5 }
  0x34   :  { %v225_v8 = vld [vmem:[#allocation5 + $0x4d0] sm:$0xff]  ;;  %v223_v12 = vld [vmem:[#allocation5 + $0x4c0] sm:$0xff]  ;;  %494 = vmatpush.msrb.mxu2 %v289_v6  ;;  %513 = vmatpush.msrb.mxu3 %v323_v7 }
  0x35   :  { %v321_v11 = vld [vmem:[#allocation5 + $0x7d0] sm:$0xff]  ;;  %v63_v14 = vld [vmem:[#allocation2] sm:$0xff]  ;;  %454 = vmatpush.msrb.mxu0 %v225_v8  ;;  %473 = vmatpush.msrb.mxu1 %v259_v9  ;;  %v961_v8 = vld.sshfl [vmem:[#allocation1 + $0x30] sm:$0xff pattern:$0x73625140] }
  0x36   :  { %v257_v13 = vld [vmem:[#allocation5 + $0x5d0] sm:$0xff]  ;;  %v67_v16 = vld [vmem:[#allocation2 + $0x20] sm:$0xff]  ;;  %341 = vst [vmem:[#allocation1] ss:$4 sm:$0xff] %v63_v14  ;;  %495 = vmatpush.msrb.mxu2 %v287_v10  ;;  %514 = vmatpush.msrb.mxu3 %v321_v11 }
  0x37   :  { %v65_v15 = vld [vmem:[#allocation2 + $0x10] sm:$0xff]  ;;  %v319_v18 = vld [vmem:[#allocation5 + $0x7c0] sm:$0xff]  ;;  %455 = vmatpush.msrb.mxu0 %v223_v12  ;;  %474 = vmatpush.msrb.mxu1 %v257_v13  ;;  %345 = vst [vmem:[#allocation1 + $0x2] ss:$4 sm:$0xff] %v67_v16 }
  0x38   :  { %v285_v17 = vld [vmem:[#allocation5 + $0x6b0] sm:$0xff]  ;;  %v255_v21 = vld [vmem:[#allocation5 + $0x5c0] sm:$0xff]  ;;  %343 = vst [vmem:[#allocation1 + $0x1] ss:$4 sm:$0xff] %v65_v15  ;;  %515 = vmatpush.msrb.mxu3 %v319_v18 }
  0x39   :  { %v69_v19 = vld [vmem:[#allocation2 + $0x30] sm:$0xff]  ;;  %v283_v22 = vld [vmem:[#allocation5 + $0x6a0] sm:$0xff]  ;;  %496 = vmatpush.msrb.mxu2 %v285_v17  ;;  %475 = vmatpush.msrb.mxu1 %v255_v21  ;;  %v963_v12 = vld.sshfl [vmem:[#allocation1 + $0x20] sm:$0xff pattern:$0x73625140] }
  0x3a   :  { %v221_v20 = vld [vmem:[#allocation5 + $0x4b0] sm:$0xff]  ;;  %v219_v24 = vld [vmem:[#allocation5 + $0x4a0] sm:$0xff]  ;;  %347 = vst [vmem:[#allocation1 + $0x3] ss:$4 sm:$0xff] %v69_v19 }
  0x3b   :  { %v317_v23 = vld [vmem:[#allocation5 + $0x7b0] sm:$0xff]  ;;  %456 = vmatpush.msrb.mxu0 %v221_v20  ;;  %v315_v27 = vld [vmem:[#allocation5 + $0x7a0] sm:$0xff]  ;;  %497 = vmatpush.msrb.mxu2 %v283_v22 }
  0x3c   :  { %v253_v25 = vld [vmem:[#allocation5 + $0x5b0] sm:$0xff]  ;;  %v251_v29 = vld [vmem:[#allocation5 + $0x5a0] sm:$0xff]  ;;  %516 = vmatpush.msrb.mxu3 %v317_v23 }
  0x3d   :  { %v281_v26 = vld [vmem:[#allocation5 + $0x690] sm:$0xff]  ;;  %v279_v30 = vld [vmem:[#allocation5 + $0x680] sm:$0xff]  ;;  %457 = vmatpush.msrb.mxu0 %v219_v24  ;;  %476 = vmatpush.msrb.mxu1 %v253_v25 }
  0x3e   :  { %v217_v28 = vld [vmem:[#allocation5 + $0x490] sm:$0xff]  ;;  %498 = vmatpush.msrb.mxu2 %v281_v26  ;;  %517 = vmatpush.msrb.mxu3 %v315_v27  ;;  %v215_v36 = vld [vmem:[#allocation5 + $0x480] sm:$0xff] }
  0x3f   :  { %v313_v31 = vld [vmem:[#allocation5 + $0x790] sm:$0xff]  ;;  %458 = vmatpush.msrb.mxu0 %v217_v28  ;;  %477 = vmatpush.msrb.mxu1 %v251_v29  ;;  %v311_v39 = vld [vmem:[#allocation5 + $0x780] sm:$0xff] }
  0x40   :  { %v249_v37 = vld [vmem:[#allocation5 + $0x590] sm:$0xff]  ;;  %499 = vmatpush.msrb.mxu2 %v279_v30  ;;  %518 = vmatpush.msrb.mxu3 %v313_v31  ;;  %v247_v41 = vld [vmem:[#allocation5 + $0x580] sm:$0xff] }
  0x41   :  { %v277_v38 = vld [vmem:[#allocation5 + $0x670] sm:$0xff]  ;;  %459 = vmatpush.msrb.mxu0 %v215_v36  ;;  %478 = vmatpush.msrb.mxu1 %v249_v37  ;;  %v275_v42 = vld [vmem:[#allocation5 + $0x660] sm:$0xff]  ;;  %v949_v52 = vld.sshfl [vmem:[#allocation1 + $0x10] sm:$0xff pattern:$0x73625140] }
  0x42   :  { %v213_v40 = vld [vmem:[#allocation5 + $0x470] sm:$0xff]  ;;  %500 = vmatpush.msrb.mxu2 %v277_v38  ;;  %519 = vmatpush.msrb.mxu3 %v311_v39  ;;  %v211_v44 = vld [vmem:[#allocation5 + $0x460] sm:$0xff]  ;;  %v951_v57 = vld.sshfl [vmem:[#allocation1] sm:$0xff pattern:$0x73625140] }
  0x43   :  { %v309_v43 = vld [vmem:[#allocation5 + $0x770] sm:$0xff]  ;;  %460 = vmatpush.msrb.mxu0 %v213_v40  ;;  %479 = vmatpush.msrb.mxu1 %v247_v41  ;;  %v307_v47 = vld [vmem:[#allocation5 + $0x760] sm:$0xff]  ;;  %v804_v37 = vld [vmem:[%s1011_s3] ss:$0 sm:$0xff] }
  0x44   :  { %v245_v45 = vld [vmem:[#allocation5 + $0x570] sm:$0xff]  ;;  %501 = vmatpush.msrb.mxu2 %v275_v42  ;;  %520 = vmatpush.msrb.mxu3 %v309_v43  ;;  %v243_v49 = vld [vmem:[#allocation5 + $0x560] sm:$0xff] }
  0x45   :  { %v273_v46 = vld [vmem:[#allocation5 + $0x650] sm:$0xff]  ;;  %461 = vmatpush.msrb.mxu0 %v211_v44  ;;  %480 = vmatpush.msrb.mxu1 %v245_v45  ;;  %v271_v50 = vld [vmem:[#allocation5 + $0x640] sm:$0xff] }
  0x46   :  { %v209_v48 = vld [vmem:[#allocation5 + $0x450] sm:$0xff]  ;;  %502 = vmatpush.msrb.mxu2 %v273_v46  ;;  %521 = vmatpush.msrb.mxu3 %v307_v47  ;;  %v207_v53 = vld [vmem:[#allocation5 + $0x440] sm:$0xff] }
  0x47   :  { %v305_v51 = vld [vmem:[#allocation5 + $0x750] sm:$0xff]  ;;  %462 = vmatpush.msrb.mxu0 %v209_v48  ;;  %481 = vmatpush.msrb.mxu1 %v243_v49  ;;  %v303_v56 = vld [vmem:[#allocation5 + $0x740] sm:$0xff] }
  0x48   :  { %v241_v54 = vld [vmem:[#allocation5 + $0x550] sm:$0xff]  ;;  %503 = vmatpush.msrb.mxu2 %v271_v50  ;;  %522 = vmatpush.msrb.mxu3 %v305_v51  ;;  %v239_v60 = vld [vmem:[#allocation5 + $0x540] sm:$0xff] }
  0x49   :  { %v269_v55 = vld [vmem:[#allocation5 + $0x630] sm:$0xff]  ;;  %428 = vmatmul.f32.vlgmr.msra.gmra.mxu2 %v949_v52  ;;  %463 = vmatpush.msrb.mxu0 %v207_v53  ;;  %v267_v61 = vld [vmem:[#allocation5 + $0x620] sm:$0xff] }
  0x4a   :  { %v954_v58 = vld.sshfl [vmem:[#allocation1 + $0x18] sm:$0xff pattern:$0x73625140]  ;;  %482 = vmatpush.msrb.mxu1 %v241_v54  ;;  %504 = vmatpush.msrb.mxu2 %v269_v55  ;;  %v957_v63 = vld.sshfl [vmem:[#allocation1 + $0x8] sm:$0xff pattern:$0x73625140] }
  0x4b   :  { %v205_v59 = vld [vmem:[#allocation5 + $0x430] sm:$0xff]  ;;  %523 = vmatpush.msrb.mxu3 %v303_v56  ;;  %388 = vmatmul.f32.vlgmr.msra.gmra.mxu0 %v951_v57  ;;  %v203_v0 = vld [vmem:[#allocation5 + $0x420] sm:$0xff] }
  0x4c   :  { %v301_v62 = vld [vmem:[#allocation5 + $0x730] sm:$0xff]  ;;  %448 = vmatmul.f32.vlgmr.msra.gmra.mxu3 %v954_v58  ;;  %464 = vmatpush.msrb.mxu0 %v205_v59  ;;  %v299_v3 = vld [vmem:[#allocation5 + $0x720] sm:$0xff]  ;;  %v166_v59 = vld [vmem:[#allocation5 + $0x2f8] sm:$0xff] }
  0x4d   :  { %v237_v1 = vld [vmem:[#allocation5 + $0x530] sm:$0xff]  ;;  %483 = vmatpush.msrb.mxu1 %v239_v60  ;;  %505 = vmatpush.msrb.mxu2 %v267_v61  ;;  %v235_v5 = vld [vmem:[#allocation5 + $0x520] sm:$0xff]  ;;  %v102_v60 = vld [vmem:[#allocation5 + $0xf8] sm:$0xff] }
  0x4e   :  { %v265_v2 = vld [vmem:[#allocation5 + $0x610] sm:$0xff]  ;;  %524 = vmatpush.msrb.mxu3 %v301_v62  ;;  %408 = vmatmul.f32.vlgmr.msra.gmra.mxu1 %v957_v63  ;;  %v263_v6 = vld [vmem:[#allocation5 + $0x600] sm:$0xff]  ;;  %v164_v61 = vld [vmem:[#allocation5 + $0x2e8] sm:$0xff] }
  0x4f   :  { %v201_v4 = vld [vmem:[#allocation5 + $0x410] sm:$0xff]  ;;  %465 = vmatpush.msrb.mxu0 %v203_v0  ;;  %484 = vmatpush.msrb.mxu1 %v237_v1  ;;  %v199_v9 = vld [vmem:[#allocation5 + $0x400] sm:$0xff]  ;;  %v198_v62 = vld [vmem:[#allocation5 + $0x3f8] sm:$0xff] }
  0x50   :  { %v297_v7 = vld [vmem:[#allocation5 + $0x710] sm:$0xff]  ;;  %506 = vmatpush.msrb.mxu2 %v265_v2  ;;  %525 = vmatpush.msrb.mxu3 %v299_v3  ;;  %v295_v11 = vld [vmem:[#allocation5 + $0x700] sm:$0xff]  ;;  %v100_v0 = vld [vmem:[#allocation5 + $0xe8] sm:$0xff] }
  0x51   :  { %466 = vmatpush.msrb.mxu0 %v201_v4  ;;  %485 = vmatpush.msrb.mxu1 %v235_v5  ;;  %v233_v10 = vld [vmem:[#allocation5 + $0x510] sm:$0xff]  ;;  %v231_v14 = vld [vmem:[#allocation5 + $0x500] sm:$0xff]  ;;  %v134_v1 = vld [vmem:[#allocation5 + $0x1f8] sm:$0xff] }
  0x52   :  { %507 = vmatpush.msrb.mxu2 %v263_v6  ;;  %526 = vmatpush.msrb.mxu3 %v297_v7  ;;  %v965_v13 = vld.sshfl [vmem:[#allocation1 + $0x38] sm:$0xff pattern:$0x73625140]  ;;  %v968_v15 = vld.sshfl [vmem:[#allocation1 + $0x28] sm:$0xff pattern:$0x73625140] }
  0x53   :  { %508 = vmatmul.f32.vlgmr.msrb.gmra.mxu2 %v961_v8  ;;  %467 = vmatpush.msrb.mxu0 %v199_v9  ;;  %v973_v16 = vld [vmem:[#allocation7] sm:$0x3]  ;;  %v162_v2 = vld [vmem:[#allocation5 + $0x2d8] sm:$0xff]  ;;  %v196_v3 = vld [vmem:[#allocation5 + $0x3e8] sm:$0xff] }
  0x54   :  { %486 = vmatpush.msrb.mxu1 %v233_v10  ;;  %527 = vmatpush.msrb.mxu3 %v295_v11  ;;  %v329_v17 = vperm.slane %v973_v16, 0  ;;  %v98_v4 = vld [vmem:[#allocation5 + $0xd8] sm:$0xff]  ;;  %v132_v5 = vld [vmem:[#allocation5 + $0x1e8] sm:$0xff] }
  0x55   :  { %468 = vmatmul.f32.vlgmr.msrb.gmra.mxu0 %v963_v12  ;;  %528 = vmatmul.f32.vlgmr.msrb.gmra.mxu3 %v965_v13  ;;  %v194_v6 = vld [vmem:[#allocation5 + $0x3d8] sm:$0xff]  ;;  %v160_v7 = vld [vmem:[#allocation5 + $0x2c8] sm:$0xff] }
  0x56   :  { %487 = vmatpush.msrb.mxu1 %v231_v14  ;;  %572 = vmatpush.msra.mxu2 %v166_v59  ;;  %v96_v9 = vld [vmem:[#allocation5 + $0xc8] sm:$0xff]  ;;  %v130_v10 = vld [vmem:[#allocation5 + $0x1d8] sm:$0xff] }
  0x57   :  { %488 = vmatmul.f32.vlgmr.msrb.gmra.mxu1 %v968_v15  ;;  %532 = vmatpush.msra.mxu0 %v102_v60  ;;  %v192_v11 = vld [vmem:[#allocation5 + $0x3c8] sm:$0xff] }
  0x58   :  { %592 = vmatpush.msra.mxu3 %v198_v62  ;;  %552 = vmatpush.msra.mxu1 %v134_v1  ;;  %v128_v14 = vld [vmem:[#allocation5 + $0x1c8] sm:$0xff] }
  0x59   :  { %573 = vmatpush.msra.mxu2 %v164_v61  ;;  %533 = vmatpush.msra.mxu0 %v100_v0  ;;  %v144_v61 = vld [vmem:[#allocation5 + $0x248] sm:$0xff] }
  0x5a   :  { %593 = vmatpush.msra.mxu3 %v196_v3  ;;  %553 = vmatpush.msra.mxu1 %v132_v5  ;;  %v80_v62 = vld [vmem:[#allocation5 + $0x48] sm:$0xff]  ;;  %v78_v5 = vld [vmem:[#allocation5 + $0x38] sm:$0xff] }
  0x5b   :  { %574 = vmatpush.msra.mxu2 %v162_v2  ;;  %534 = vmatpush.msra.mxu0 %v98_v4  ;;  %v176_v0 = vld [vmem:[#allocation5 + $0x348] sm:$0xff]  ;;  %v142_v4 = vld [vmem:[#allocation5 + $0x238] sm:$0xff] }
  0x5c   :  { %594 = vmatpush.msra.mxu3 %v194_v6  ;;  %554 = vmatpush.msra.mxu1 %v130_v10  ;;  %v112_v1 = vld [vmem:[#allocation5 + $0x148] sm:$0xff]  ;;  %v174_v6 = vld [vmem:[#allocation5 + $0x338] sm:$0xff] }
  0x5d   :  { %575 = vmatpush.msra.mxu2 %v160_v7  ;;  %535 = vmatpush.msra.mxu0 %v96_v9  ;;  %v110_v7 = vld [vmem:[#allocation5 + $0x138] sm:$0xff]  ;;  %v140_v10 = vld [vmem:[#allocation5 + $0x228] sm:$0xff] }
  0x5e   :  { %595 = vmatpush.msra.mxu3 %v192_v11  ;;  %555 = vmatpush.msra.mxu1 %v128_v14  ;;  %v76_v11 = vld [vmem:[#allocation5 + $0x28] sm:$0xff] }
  0x5f   :  { %v172_v14 = vld [vmem:[#allocation5 + $0x328] sm:$0xff] }
  0xc8   :  { %v389_v18 = vpop.f32.mrf.mxu0 }
  0xc9   :  { %v390_v19 = vadd.f32 %v389_v18, %v329_v17  ;;  %v158_v17 = vld [vmem:[#allocation5 + $0x2b8] sm:$0xff] }
  0xca   :  { %v94_v18 = vld [vmem:[#allocation5 + $0xb8] sm:$0xff]  ;;  %576 = vmatpush.msra.mxu2 %v158_v17  ;;  %v108_v17 = vld [vmem:[#allocation5 + $0x128] sm:$0xff] }
  0xcb   :  { %v409_v20 = vpop.f32.mrf.mxu1  ;;  %536 = vmatpush.msra.mxu0 %v94_v18 }
  0xcc   :  { %v410_v21 = vadd.f32 %v409_v20, %v390_v19  ;;  %v429_v22 = vpop.f32.mrf.mxu2  ;;  %v190_v19 = vld [vmem:[#allocation5 + $0x3b8] sm:$0xff] }
  0xcd   :  { %v126_v20 = vld [vmem:[#allocation5 + $0x1b8] sm:$0xff]  ;;  %596 = vmatpush.msra.mxu3 %v190_v19 }
  0xce   :  { %v430_v23 = vadd.f32 %v429_v22, %v410_v21  ;;  %v156_v21 = vld [vmem:[#allocation5 + $0x2a8] sm:$0xff]  ;;  %556 = vmatpush.msra.mxu1 %v126_v20  ;;  %v138_v19 = vld [vmem:[#allocation5 + $0x218] sm:$0xff] }
  0xcf   :  { %v449_v24 = vpop.f32.mrf.mxu3  ;;  %v92_v22 = vld [vmem:[#allocation5 + $0xa8] sm:$0xff]  ;;  %577 = vmatpush.msra.mxu2 %v156_v21  ;;  %v74_v20 = vld [vmem:[#allocation5 + $0x18] sm:$0xff] }
  0xd0   :  { %v450_v25 = vadd.f32 %v449_v24, %v430_v23  ;;  %v188_v24 = vld [vmem:[#allocation5 + $0x3a8] sm:$0xff]  ;;  %537 = vmatpush.msra.mxu0 %v92_v22  ;;  %v170_v21 = vld [vmem:[#allocation5 + $0x318] sm:$0xff] }
  0xd1   :  { %597 = vmatpush.msra.mxu3 %v188_v24  ;;  %v106_v22 = vld [vmem:[#allocation5 + $0x118] sm:$0xff]  ;;  %v136_v24 = vld [vmem:[#allocation5 + $0x208] sm:$0xff] }
  0xd2   :  { %v469_v26 = vpop.f32.mrf.mxu0 }
  0xd3   :  { %v470_v27 = vadd.f32 %v469_v26, %v450_v25  ;;  %v124_v25 = vld [vmem:[#allocation5 + $0x1a8] sm:$0xff] }
  0xd4   :  { %v489_v28 = vpop.f32.mrf.mxu1  ;;  %557 = vmatpush.msra.mxu1 %v124_v25  ;;  %v72_v25 = vld [vmem:[#allocation5 + $0x8] sm:$0xff] }
  0xd5   :  { %v490_v29 = vadd.f32 %v489_v28, %v470_v27  ;;  %v154_v27 = vld [vmem:[#allocation5 + $0x298] sm:$0xff] }
  0xd6   :  { %v509_v30 = vpop.f32.mrf.mxu2  ;;  %v90_v28 = vld [vmem:[#allocation5 + $0x98] sm:$0xff]  ;;  %578 = vmatpush.msra.mxu2 %v154_v27 }
  0xd7   :  { %v510_v31 = vadd.f32 %v509_v30, %v490_v29  ;;  %v186_v29 = vld [vmem:[#allocation5 + $0x398] sm:$0xff]  ;;  %538 = vmatpush.msra.mxu0 %v90_v28  ;;  %v168_v28 = vld [vmem:[#allocation5 + $0x308] sm:$0xff] }
  0xd8   :  { %v529_v32 = vpop.f32.mrf.mxu3  ;;  %v122_v30 = vld [vmem:[#allocation5 + $0x198] sm:$0xff]  ;;  %598 = vmatpush.msra.mxu3 %v186_v29 }
  0xd9   :  { %v530_v33 = vadd.f32 %v529_v32, %v510_v31  ;;  %v152_v32 = vld [vmem:[#allocation5 + $0x288] sm:$0xff]  ;;  %558 = vmatpush.msra.mxu1 %v122_v30  ;;  %v230_v29 = vld [vmem:[#allocation5 + $0x4f8] sm:$0xff] }
  0xda   :  { %579 = vmatpush.msra.mxu2 %v152_v32  ;;  %v292_v30 = vld [vmem:[#allocation5 + $0x6e8] sm:$0xff] }
  0xdb   :  { %v694_v34 = vmul.f32 0.5, %v530_v33  ;;  %v693_v35 = vadd.f32 1.0, %v530_v33  ;;  %v228_v32 = vld [vmem:[#allocation5 + $0x4e8] sm:$0xff] }
  0xdd   :  { %v695_v36 = vmul.f32 %v694_v34, %v530_v33  ;;  %v88_v33 = vld [vmem:[#allocation5 + $0x88] sm:$0xff] }
  0xde   :  { %v184_v34 = vld [vmem:[#allocation5 + $0x388] sm:$0xff]  ;;  %539 = vmatpush.msra.mxu0 %v88_v33  ;;  %v262_v33 = vld [vmem:[#allocation5 + $0x5f8] sm:$0xff] }
  0xdf   :  { %v696_v38 = vadd.f32 %v695_v36, %v693_v35  ;;  %v120_v35 = vld [vmem:[#allocation5 + $0x188] sm:$0xff]  ;;  %599 = vmatpush.msra.mxu3 %v184_v34  ;;  %v290_v34 = vld [vmem:[#allocation5 + $0x6d8] sm:$0xff] }
  0xe0   :  { %559 = vmatpush.msra.mxu1 %v120_v35  ;;  %v324_v35 = vld [vmem:[#allocation5 + $0x7e8] sm:$0xff] }
  0xe1   :  { %v700_v39 = vmul.f32 %v804_v37, %v696_v38  ;;  %v150_v37 = vld [vmem:[#allocation5 + $0x278] sm:$0xff] }
  0xe2   :  { %v86_v38 = vld [vmem:[#allocation5 + $0x78] sm:$0xff]  ;;  %580 = vmatpush.msra.mxu2 %v150_v37  ;;  %v260_v37 = vld [vmem:[#allocation5 + $0x5e8] sm:$0xff] }
  0xe3   :  { %701 = vadd.xlane.f32.xlu0 %v700_v39  ;;  %540 = vmatpush.msra.mxu0 %v86_v38  ;;  %v288_v38 = vld [vmem:[#allocation5 + $0x6c8] sm:$0xff] }
 0x156   :  { %v702_v40 = vpop.xlane.xlu0 %701 }
 0x157   :  { %v703_v41 = vmul.f32 0.06666667, %v702_v40  ;;  %v118_v40 = vld [vmem:[#allocation5 + $0x178] sm:$0xff] }
 0x158   :  { %560 = vmatpush.msra.mxu1 %v118_v40  ;;  %v224_v40 = vld [vmem:[#allocation5 + $0x4c8] sm:$0xff] }
 0x159   :  { %v705_v42 = vsub.f32 1.0, %v703_v41  ;;  %v704_v44 = vsub.f32 2.0, %v703_v41 }
 0x15b   :  { %v706_v43 = vmul.f32 %v705_v42, %v705_v42  ;;  %v148_v42 = vld [vmem:[#allocation5 + $0x268] sm:$0xff] }
 0x15c   :  { %581 = vmatpush.msra.mxu2 %v148_v42  ;;  %v286_v42 = vld [vmem:[#allocation5 + $0x6b8] sm:$0xff] }
 0x15d   :  { %v707_v45 = vadd.f32 1.0, %v706_v43  ;;  %v709_v46 = vmul.f32 %v706_v43, %v706_v43  ;;  %v84_v43 = vld [vmem:[#allocation5 + $0x68] sm:$0xff] }
 0x15e   :  { %541 = vmatpush.msra.mxu0 %v84_v43  ;;  %v320_v43 = vld [vmem:[#allocation5 + $0x7c8] sm:$0xff] }
 0x15f   :  { %v708_v47 = vmul.f32 %v707_v45, %v704_v44  ;;  %v710_v48 = vadd.f32 1.0, %v709_v46  ;;  %v712_v49 = vmul.f32 %v709_v46, %v709_v46  ;;  %v180_v44 = vld [vmem:[#allocation5 + $0x368] sm:$0xff] }
 0x160   :  { %v116_v45 = vld [vmem:[#allocation5 + $0x168] sm:$0xff] }
 0x161   :  { %v711_v50 = vmul.f32 %v710_v48, %v708_v47  ;;  %v713_v51 = vadd.f32 1.0, %v712_v49  ;;  %v146_v49 = vld [vmem:[#allocation5 + $0x258] sm:$0xff]  ;;  %561 = vmatpush.msra.mxu1 %v116_v45  ;;  %v256_v45 = vld [vmem:[#allocation5 + $0x5c8] sm:$0xff] }
 0x162   :  { %582 = vmatpush.msra.mxu2 %v146_v49  ;;  %v254_v49 = vld [vmem:[#allocation5 + $0x5b8] sm:$0xff] }
 0x163   :  { %v714_v53 = vmul.f32 %v713_v51, %v711_v50  ;;  %v82_v50 = vld [vmem:[#allocation5 + $0x58] sm:$0xff] }
 0x164   :  { %v178_v51 = vld [vmem:[#allocation5 + $0x358] sm:$0xff]  ;;  %542 = vmatpush.msra.mxu0 %v82_v50  ;;  %583 = vmatpush.msra.mxu2 %v144_v61  ;;  %v216_v61 = vld [vmem:[#allocation5 + $0x488] sm:$0xff] }
 0x165   :  { %v715_v54 = vmul.f32 0.06666667, %v714_v53  ;;  %v114_v53 = vld [vmem:[#allocation5 + $0x158] sm:$0xff] }
 0x166   :  { %562 = vmatpush.msra.mxu1 %v114_v53  ;;  %543 = vmatpush.msra.mxu0 %v80_v62  ;;  %v282_v50 = vld [vmem:[#allocation5 + $0x698] sm:$0xff] }
 0x167   :  { %v979_v55 = vmul.f32 %v715_v54, %v700_v39  ;;  %v182_v39 = vld [vmem:[#allocation5 + $0x378] sm:$0xff]  ;;  %584 = vmatpush.msra.mxu2 %v142_v4  ;;  %v276_v4 = vld [vmem:[#allocation5 + $0x668] sm:$0xff] }
 0x168   :  { %600 = vmatpush.msra.mxu3 %v182_v39  ;;  %563 = vmatpush.msra.mxu1 %v112_v1  ;;  %v322_v39 = vld [vmem:[#allocation5 + $0x7d8] sm:$0xff]  ;;  %v312_v1 = vld [vmem:[#allocation5 + $0x788] sm:$0xff] }
 0x169   :  { %v983_v56 = vmul.f32 %v979_v55, %v979_v55  ;;  %544 = vmatpush.msra.mxu0 %v78_v5  ;;  %585 = vmatpush.msra.mxu2 %v140_v10  ;;  %v218_v53 = vld [vmem:[#allocation5 + $0x498] sm:$0xff]  ;;  %v272_v10 = vld [vmem:[#allocation5 + $0x648] sm:$0xff] }
 0x16a   :  { %601 = vmatpush.msra.mxu3 %v180_v44  ;;  %564 = vmatpush.msra.mxu1 %v110_v7  ;;  %v222_v44 = vld [vmem:[#allocation5 + $0x4b8] sm:$0xff] }
 0x16b   :  { %718 = vadd.xlane.f32.xlu0 %v983_v56  ;;  %545 = vmatpush.msra.mxu0 %v76_v11  ;;  %v250_v62 = vld [vmem:[#allocation5 + $0x598] sm:$0xff]  ;;  %v208_v11 = vld [vmem:[#allocation5 + $0x448] sm:$0xff] }
 0x16c   :  { %602 = vmatpush.msra.mxu3 %v178_v51  ;;  %565 = vmatpush.msra.mxu1 %v108_v17  ;;  %v316_v51 = vld [vmem:[#allocation5 + $0x7a8] sm:$0xff]  ;;  %v310_v5 = vld [vmem:[#allocation5 + $0x778] sm:$0xff] }
 0x16d   :  { %586 = vmatpush.msra.mxu2 %v138_v19  ;;  %546 = vmatpush.msra.mxu0 %v74_v20  ;;  %v246_v7 = vld [vmem:[#allocation5 + $0x578] sm:$0xff]  ;;  %v304_v19 = vld [vmem:[#allocation5 + $0x748] sm:$0xff] }
 0x16e   :  { %603 = vmatpush.msra.mxu3 %v176_v0  ;;  %566 = vmatpush.msra.mxu1 %v106_v22  ;;  %v278_v0 = vld [vmem:[#allocation5 + $0x678] sm:$0xff]  ;;  %v268_v22 = vld [vmem:[#allocation5 + $0x628] sm:$0xff] }
 0x16f   :  { %587 = vmatpush.msra.mxu2 %v136_v24  ;;  %547 = vmatpush.msra.mxu0 %v72_v25  ;;  %v270_v17 = vld [vmem:[#allocation5 + $0x638] sm:$0xff]  ;;  %v204_v24 = vld [vmem:[#allocation5 + $0x428] sm:$0xff] }
 0x170   :  { %604 = vmatpush.msra.mxu3 %v174_v6  ;;  %588 = vmatmul.f32.vlgmr.msra.gmra.mxu2 %v949_v52  ;;  %v212_v6 = vld [vmem:[#allocation5 + $0x468] sm:$0xff]  ;;  %v206_v20 = vld [vmem:[#allocation5 + $0x438] sm:$0xff] }
 0x171   :  { %612 = vmatpush.msrb.mxu0 %v230_v29  ;;  %v308_v52 = vld [vmem:[#allocation5 + $0x768] sm:$0xff]  ;;  %v238_v25 = vld [vmem:[#allocation5 + $0x538] sm:$0xff] }
 0x172   :  { %605 = vmatpush.msra.mxu3 %v172_v14  ;;  %548 = vmatmul.f32.vlgmr.msra.gmra.mxu0 %v951_v57  ;;  %v210_v57 = vld [vmem:[#allocation5 + $0x458] sm:$0xff] }
 0x173   :  { %613 = vmatpush.msrb.mxu0 %v228_v32  ;;  %v242_v14 = vld [vmem:[#allocation5 + $0x558] sm:$0xff]  ;;  %v200_v32 = vld [vmem:[#allocation5 + $0x408] sm:$0xff] }
 0x174   :  { %606 = vmatpush.msra.mxu3 %v170_v21  ;;  %v240_v21 = vld [vmem:[#allocation5 + $0x548] sm:$0xff]  ;;  %v202_v29 = vld [vmem:[#allocation5 + $0x418] sm:$0xff] }
 0x176   :  { %607 = vmatpush.msra.mxu3 %v168_v28  ;;  %v300_v28 = vld [vmem:[#allocation5 + $0x728] sm:$0xff] }
 0x177   :  { %608 = vmatmul.f32.vlgmr.msra.gmra.mxu3 %v954_v58  ;;  %v244_v58 = vld [vmem:[#allocation5 + $0x568] sm:$0xff] }
 0x1de   :  { %v719_v23 = vpop.xlane.xlu0 %718 }
 0x1df   :  { %v720_v26 = vadd.f32 0.25, %v719_v23 }
 0x1e1   :  { %v721_v31 = vmul.f32 0.8888889, %v720_v26  ;;  %v294_v26 = vld [vmem:[#allocation5 + $0x6f8] sm:$0xff] }
 0x1e2   :  { %652 = vmatpush.msrb.mxu2 %v294_v26  ;;  %v266_v26 = vld [vmem:[#allocation5 + $0x618] sm:$0xff] }
 0x1e3   :  { %v723_v36 = vsub.f32 1.0, %v721_v31  ;;  %v722_v46 = vsub.f32 2.0, %v721_v31  ;;  %v326_v31 = vld [vmem:[#allocation5 + $0x7f8] sm:$0xff] }
 0x1e4   :  { %653 = vmatpush.msrb.mxu2 %v292_v30  ;;  %672 = vmatpush.msrb.mxu3 %v326_v31  ;;  %v236_v30 = vld [vmem:[#allocation5 + $0x528] sm:$0xff] }
 0x1e5   :  { %v724_v41 = vmul.f32 %v723_v36, %v723_v36  ;;  %v226_v36 = vld [vmem:[#allocation5 + $0x4d8] sm:$0xff]  ;;  %v264_v31 = vld [vmem:[#allocation5 + $0x608] sm:$0xff] }
 0x1e6   :  { %654 = vmatpush.msrb.mxu2 %v290_v34  ;;  %673 = vmatpush.msrb.mxu3 %v324_v35  ;;  %v296_v34 = vld [vmem:[#allocation5 + $0x708] sm:$0xff] }
 0x1e7   :  { %v725_v47 = vadd.f32 1.0, %v724_v41  ;;  %v727_v48 = vmul.f32 %v724_v41, %v724_v41  ;;  %614 = vmatpush.msrb.mxu0 %v226_v36  ;;  %v258_v41 = vld [vmem:[#allocation5 + $0x5d8] sm:$0xff]  ;;  %v232_v35 = vld [vmem:[#allocation5 + $0x508] sm:$0xff] }
 0x1e8   :  { %655 = vmatpush.msrb.mxu2 %v288_v38  ;;  %674 = vmatpush.msrb.mxu3 %v322_v39 }
 0x1e9   :  { %v726_v54 = vmul.f32 %v725_v47, %v722_v46  ;;  %v728_v59 = vadd.f32 1.0, %v727_v48  ;;  %v730_v60 = vmul.f32 %v727_v48, %v727_v48  ;;  %615 = vmatpush.msrb.mxu0 %v224_v40  ;;  %v284_v46 = vld [vmem:[#allocation5 + $0x6a8] sm:$0xff]  ;;  %v318_v47 = vld [vmem:[#allocation5 + $0x7b8] sm:$0xff] }
 0x1ea   :  { %656 = vmatpush.msrb.mxu2 %v286_v42  ;;  %v220_v48 = vld [vmem:[#allocation5 + $0x4a8] sm:$0xff]  ;;  %675 = vmatpush.msrb.mxu3 %v320_v43 }
 0x1eb   :  { %v729_v2 = vmul.f32 %v728_v59, %v726_v54  ;;  %v731_v3 = vadd.f32 1.0, %v730_v60  ;;  %616 = vmatpush.msrb.mxu0 %v222_v44  ;;  %v252_v54 = vld [vmem:[#allocation5 + $0x5a8] sm:$0xff]  ;;  %v314_v60 = vld [vmem:[#allocation5 + $0x798] sm:$0xff] }
 0x1ec   :  { %657 = vmatpush.msrb.mxu2 %v284_v46  ;;  %676 = vmatpush.msrb.mxu3 %v318_v47  ;;  %v280_v59 = vld [vmem:[#allocation5 + $0x688] sm:$0xff] }
 0x1ed   :  { %v732_v9 = vmul.f32 %v731_v3, %v729_v2  ;;  %617 = vmatpush.msrb.mxu0 %v220_v48  ;;  %v214_v2 = vld [vmem:[#allocation5 + $0x478] sm:$0xff]  ;;  %v248_v3 = vld [vmem:[#allocation5 + $0x588] sm:$0xff] }
 0x1ee   :  { %658 = vmatpush.msrb.mxu2 %v282_v50  ;;  %677 = vmatpush.msrb.mxu3 %v316_v51 }
 0x1ef   :  { %v986_v18 = vmul.f32 0.8888889, %v732_v9  ;;  %618 = vmatpush.msrb.mxu0 %v218_v53  ;;  %v274_v9 = vld [vmem:[#allocation5 + $0x658] sm:$0xff]  ;;  %v549_v50 = vpop.f32.mrf.mxu0 }
 0x1f0   :  { %659 = vmatpush.msrb.mxu2 %v280_v59  ;;  %678 = vmatpush.msrb.mxu3 %v314_v60 }
 0x1f1   :  { %v734_v23 = vmul.f32 %v986_v18, %v983_v56  ;;  %v104_v56 = vld [vmem:[#allocation5 + $0x108] sm:$0xff]  ;;  %619 = vmatpush.msrb.mxu0 %v216_v61  ;;  %v735_v36 = vmul.f32 0.25, %v986_v18  ;;  %v330_v18 = vperm.slane %v973_v16, 1 }
 0x1f2   :  { %567 = vmatpush.msra.mxu1 %v104_v56  ;;  %660 = vmatpush.msrb.mxu2 %v278_v0  ;;  %v298_v56 = vld [vmem:[#allocation5 + $0x718] sm:$0xff] }
 0x1f3   :  { %v990_v27 = vmul.f32 %v734_v23, %v734_v23  ;;  %679 = vmatpush.msrb.mxu3 %v312_v1  ;;  %568 = vmatmul.f32.vlgmr.msra.gmra.mxu1 %v957_v63  ;;  %v306_v63 = vld [vmem:[#allocation5 + $0x758] sm:$0xff]  ;;  %v550_v51 = vadd.f32 %v549_v50, %v330_v18  ;;  %v589_v59 = vpop.f32.mrf.mxu2 }
 0x1f4   :  { %632 = vmatpush.msrb.mxu1 %v262_v33  ;;  %620 = vmatpush.msrb.mxu0 %v214_v2  ;;  %v302_v23 = vld [vmem:[#allocation5 + $0x738] sm:$0xff] }
 0x1f5   :  { %738 = vadd.xlane.f32.xlu1 %v990_v27  ;;  %661 = vmatpush.msrb.mxu2 %v276_v4  ;;  %v234_v33 = vld [vmem:[#allocation5 + $0x518] sm:$0xff] }
 0x1f6   :  { %633 = vmatpush.msrb.mxu1 %v260_v37  ;;  %680 = vmatpush.msrb.mxu3 %v310_v5  ;;  %v737_v37 = vmul.f32 %v735_v36, %v735_v36 }
 0x1f7   :  { %621 = vmatpush.msrb.mxu0 %v212_v6  ;;  %662 = vmatpush.msrb.mxu2 %v274_v9 }
 0x1f8   :  { %634 = vmatpush.msrb.mxu1 %v258_v41  ;;  %681 = vmatpush.msrb.mxu3 %v308_v52 }
 0x1f9   :  { %622 = vmatpush.msrb.mxu0 %v210_v57  ;;  %663 = vmatpush.msrb.mxu2 %v272_v10 }
 0x1fa   :  { %635 = vmatpush.msrb.mxu1 %v256_v45  ;;  %682 = vmatpush.msrb.mxu3 %v306_v63  ;;  %v609_v61 = vpop.f32.mrf.mxu3 }
 0x1fb   :  { %623 = vmatpush.msrb.mxu0 %v208_v11  ;;  %664 = vmatpush.msrb.mxu2 %v270_v17 }
 0x1fc   :  { %636 = vmatpush.msrb.mxu1 %v254_v49  ;;  %683 = vmatpush.msrb.mxu3 %v304_v19 }
 0x1fd   :  { %624 = vmatpush.msrb.mxu0 %v206_v20  ;;  %665 = vmatpush.msrb.mxu2 %v268_v22 }
 0x1fe   :  { %637 = vmatpush.msrb.mxu1 %v252_v54  ;;  %684 = vmatpush.msrb.mxu3 %v302_v23 }
 0x1ff   :  { %625 = vmatpush.msrb.mxu0 %v204_v24  ;;  %666 = vmatpush.msrb.mxu2 %v266_v26 }
 0x200   :  { %638 = vmatpush.msrb.mxu1 %v250_v62  ;;  %685 = vmatpush.msrb.mxu3 %v300_v28 }
 0x201   :  { %626 = vmatpush.msrb.mxu0 %v202_v29  ;;  %667 = vmatpush.msrb.mxu2 %v264_v31 }
 0x202   :  { %639 = vmatpush.msrb.mxu1 %v248_v3  ;;  %686 = vmatpush.msrb.mxu3 %v298_v56 }
 0x203   :  { %668 = vmatmul.f32.vlgmr.msrb.gmra.mxu2 %v961_v8  ;;  %627 = vmatpush.msrb.mxu0 %v200_v32 }
 0x204   :  { %640 = vmatpush.msrb.mxu1 %v246_v7  ;;  %687 = vmatpush.msrb.mxu3 %v296_v34 }
 0x205   :  { %628 = vmatmul.f32.vlgmr.msrb.gmra.mxu0 %v963_v12  ;;  %688 = vmatmul.f32.vlgmr.msrb.gmra.mxu3 %v965_v13 }
 0x206   :  { %641 = vmatpush.msrb.mxu1 %v244_v58 }
 0x208   :  { %642 = vmatpush.msrb.mxu1 %v242_v14 }
 0x20a   :  { %643 = vmatpush.msrb.mxu1 %v240_v21 }
 0x20c   :  { %644 = vmatpush.msrb.mxu1 %v238_v25 }
 0x20e   :  { %645 = vmatpush.msrb.mxu1 %v236_v30 }
 0x210   :  { %646 = vmatpush.msrb.mxu1 %v234_v33 }
 0x212   :  { %647 = vmatpush.msrb.mxu1 %v232_v35 }
 0x213   :  { %648 = vmatmul.f32.vlgmr.msrb.gmra.mxu1 %v968_v15 }
 0x268   :  { %v739_v38 = vpop.xlane.xlu1 %738 }
 0x269   :  { %v740_v39 = vadd.f32 %v739_v38, %v737_v37 }
 0x26b   :  { %v742_v40 = vsub.f32 1.0, %v740_v39  ;;  %v741_v42 = vsub.f32 2.0, %v740_v39 }
 0x26d   :  { %v743_v41 = vmul.f32 %v742_v40, %v742_v40 }
 0x26f   :  { %v744_v8 = vadd.f32 1.0, %v743_v41  ;;  %v746_v43 = vmul.f32 %v743_v41, %v743_v41 }
 0x270   :  { %v569_v53 = vpop.f32.mrf.mxu1 }
 0x271   :  { %v745_v44 = vmul.f32 %v744_v8, %v741_v42  ;;  %v747_v45 = vadd.f32 1.0, %v746_v43  ;;  %v749_v46 = vmul.f32 %v746_v43, %v746_v43  ;;  %v570_v54 = vadd.f32 %v569_v53, %v550_v51 }
 0x273   :  { %v748_v47 = vmul.f32 %v747_v45, %v745_v44  ;;  %v750_v12 = vadd.f32 1.0, %v749_v46  ;;  %v590_v60 = vadd.f32 %v589_v59, %v570_v54 }
 0x275   :  { %v751_v48 = vmul.f32 %v750_v12, %v748_v47  ;;  %v610_v0 = vadd.f32 %v609_v61, %v590_v60 }
 0x277   :  { %v752_v13 = vmul.f32 %v751_v48, %v990_v27  ;;  %v753_v49 = vmul.f32 %v751_v48, %v737_v37 }
 0x279   :  { %v754_v15 = vmul.f32 %v752_v13, %v752_v13  ;;  %v755_v62 = vmul.f32 %v753_v49, %v753_v49 }
 0x27b   :  { %756 = vadd.xlane.f32.xlu1 %v754_v15 }
 0x282   :  { %v629_v2 = vpop.f32.mrf.mxu0 }
 0x283   :  { %v630_v5 = vadd.f32 %v629_v2, %v610_v0 }
 0x286   :  { %v669_v57 = vpop.f32.mrf.mxu2 }
 0x288   :  { %v689_v19 = vpop.f32.mrf.mxu3 }
 0x290   :  { %v649_v27 = vpop.f32.mrf.mxu1 }
 0x291   :  { %v650_v16 = vadd.f32 %v649_v27, %v630_v5 }
 0x293   :  { %v670_v17 = vadd.f32 %v669_v57, %v650_v16 }
 0x295   :  { %v690_v21 = vadd.f32 %v689_v19, %v670_v17 }
 0x2ee   :  { %v757_v1 = vpop.xlane.xlu1 %756 }
 0x2ef   :  { %v758_v3 = vadd.f32 %v757_v1, %v755_v62 }
 0x2f1   :  { %v760_v4 = vsub.f32 1.0, %v758_v3  ;;  %v759_v7 = vsub.f32 2.0, %v758_v3 }
 0x2f3   :  { %v761_v6 = vmul.f32 %v760_v4, %v760_v4 }
 0x2f5   :  { %v762_v9 = vadd.f32 1.0, %v761_v6  ;;  %v764_v52 = vmul.f32 %v761_v6, %v761_v6 }
 0x2f7   :  { %v763_v58 = vmul.f32 %v762_v9, %v759_v7  ;;  %v765_v10 = vadd.f32 1.0, %v764_v52  ;;  %v767_v63 = vmul.f32 %v764_v52, %v764_v52 }
 0x2f9   :  { %v766_v11 = vmul.f32 %v765_v10, %v763_v58  ;;  %v768_v14 = vadd.f32 1.0, %v767_v63 }
 0x2fb   :  { %v769_v20 = vmul.f32 %v768_v14, %v766_v11 }
 0x2fd   :  { %v770_v22 = vmul.f32 %v769_v20, %v755_v62 }
 0x2ff   :  { %v771_v23 = vsub.f32 1.0, %v770_v22  ;;  %v773_v25 = vmul.f32 %v770_v22, %v690_v21 }
 0x301   :  { %v772_v24 = vmul.f32 %v771_v23, %v979_v55 }
 0x303   :  { %v774_v26 = vadd.f32 %v773_v25, %v772_v24 }
 0x305   :  { %775 = vst [vmem:[#allocation8] sm:$0xff] %v774_v26 }
 0x306   :  { %779 = vsyncadd [#allocation4], 96  ;;  %s782_s6 = sshll.u32 %s1012_s4, 4  ;;  %s912_s7 = smov [#allocation8]   ;;  %s783_s6 = int_to_ptr.hbm [resolvable:$true] %s782_s6 }
 0x307   :  { %s780_s8 = sshll.u32 %s912_s7, 4  ;;  %s913_s9 = smov 32   ;;  %s781_s8 = int_to_ptr.vmem [resolvable:$true] %s780_s8 }
 0x308   :  { %s914_s10 = smov 2  }
 0x309   :  { %788 = dma.vmem_to_hbm [thread:$0]  %s781_s8, 32, %s783_s6, [#allocation4], %s913_s9, %s913_s9, %s914_s10  }
 0x30a   :  { %905 = dma.done.wait [#allocation4], 128  }
 0x30b   :  { %906 = vsyncadd [#allocation4], 4294967168 }
 0x30c   :  { %793 = vsyncpa [#allocation3], 1 }
 0x30d   :  { %794 = vsyncpa [#allocation6], 1 }
 0x30e   :  { %795 = vsyncpa [#allocation4], 1 }

</bundles_post_ra>
